<compile_context>
chip_gen: v7x
topology: tpu7x:2x2x1
jax: 0.10.0
libtpu: 0.0.40
codegen_flags: <defaults>
</compile_context>

<pallas_src>
import functools

import jax
import jax.numpy as jnp
import numpy as np
from jax.experimental import pallas as pl
from jax.experimental.pallas import tpu as pltpu


def _round_up(x, m):
    return ((x + m - 1) // m) * m


def _gather_onehot(idx_row_ref, n_nodes, dtype):
    """(N, Te) one-hot gather mask: [n, e] = 1 iff idx[e] == n (built on-chip)."""
    idx = idx_row_ref[...]                                              # (1, Te) int32
    nodes = jax.lax.broadcasted_iota(jnp.int32, (n_nodes, idx.shape[-1]), 0)
    return (nodes == idx).astype(dtype)


def _scatter_onehot(idx_col_ref, n_nodes, dtype):
    """(Te, N) one-hot scatter mask: [e, n] = 1 iff idx[e] == n (built on-chip)."""
    idx = idx_col_ref[...]                                              # (Te, 1) int32
    nodes = jax.lax.broadcasted_iota(jnp.int32, (idx.shape[0], n_nodes), 1)
    return (nodes == idx).astype(dtype)


def _head_mask(rows, cols, d, dtype):
    """Block-diagonal 0/1 head mask of shape (rows, cols)."""
    r = jax.lax.broadcasted_iota(jnp.int32, (rows, cols), 0)
    c = jax.lax.broadcasted_iota(jnp.int32, (rows, cols), 1)
    if rows < cols:            # (H, E): mask[h, i] = 1 iff i in head h
        h, i = r, c
    else:                      # (E, H): mask[i, h] = 1 iff i in head h
        i, h = r, c
    lo = h * d
    return ((i >= lo) & (i < lo + d)).astype(dtype)


# ---------------------------------------------------------------------------
# Pass 1: gather pre-projected q / (k||v) per edge, per-head scores, exp,
#         scatter-add of expAtt into the per-node normalizer (per-core partial).
# ---------------------------------------------------------------------------
def gt_attention_kernel(rows_r_ref, rows_c_ref, cols_r_ref,
                        nodeQT_ref, nodeKVT_ref,
                        expT_ref, vT_ref, normT_ref,
                        *, n_nodes, n_edges, emb, heads, tile, tiles_per_core):
    c = pl.program_id(0)
    t = pl.program_id(1)
    e0 = (c * tiles_per_core + t) * tile        # global edge offset of this tile

    @pl.when(t == 0)
    def _init():
        normT_ref[...] = jnp.zeros_like(normT_ref)

    # bf16 one-hot masks built on-chip (zero HBM traffic).
    gather_rows = _gather_onehot(rows_r_ref, n_nodes, jnp.bfloat16)     # (N, Te)
    gather_cols = _gather_onehot(cols_r_ref, n_nodes, jnp.bfloat16)     # (N, Te)

    # Exact one-hot gathers of the pre-projected node features (bf16 MXU, f32 acc).
    qT = jnp.dot(nodeQT_ref[...], gather_rows,
                 preferred_element_type=jnp.float32)                    # (E,  Te)
    kvT = jnp.dot(nodeKVT_ref[...], gather_cols,
                  preferred_element_type=jnp.float32)                   # (2E, Te)
    kT = kvT[:emb, :]
    vT = kvT[emb:, :]

    # Per-head dot products via a block-diagonal mask matmul (f32 for the logits).
    d = emb // heads
    headM = _head_mask(heads, emb, d, jnp.float32)                      # (H, E)
    att_raw = jnp.dot(headM, qT * kT,
                      preferred_element_type=jnp.float32)               # (H, Te)

    # Zero padded tail edges (their indices were padded to 0).
    lane = jax.lax.broadcasted_iota(jnp.int32, (1, tile), 1)
    valid = (e0 + lane) < n_edges                                       # (1, Te) bool
    expAtt = jnp.where(valid, jnp.exp(jnp.clip(att_raw, -10.0, 10.0)), 0.0)

    expT_ref[...] = expAtt                                              # lane-dense store
    vT_ref[...] = vT.astype(jnp.bfloat16)                               # bf16 cross-pass

    # attNorm^T[h, n] += sum_e expAtt[h, e] * onehot_rows[e, n]   (index_add_)
    # kept f32 (exact) -- tiny matmul, accuracy of the softmax denominator matters.
    scatter_rows = _scatter_onehot(rows_c_ref, n_nodes, jnp.float32)    # (Te, N)
    normT_ref[0] = normT_ref[0] + jnp.dot(expAtt, scatter_rows,
                                          preferred_element_type=jnp.float32)


# ---------------------------------------------------------------------------
# Pass 2: normalize attention per edge, head-broadcast, scatter-add att*v into
#         the per-node result (per-core partial).
# ---------------------------------------------------------------------------
def gt_aggregate_kernel(rows_r_ref, rows_c_ref, expT_ref, vT_ref, normT_ref,
                        attT_ref, resT_ref,
                        *, n_nodes, n_edges, emb, heads, tile, tiles_per_core):
    t = pl.program_id(1)

    @pl.when(t == 0)
    def _init():
        resT_ref[...] = jnp.zeros_like(resT_ref)

    expAtt = expT_ref[...]                                              # (H, Te) f32

    # Gather each edge's row-normalizer (exact f32 gather).  Padded tail edges read
    # node 0's normalizer; harmless because their expAtt is exactly zero (pass 1).
    gather_rows = _gather_onehot(rows_r_ref, n_nodes, jnp.float32)      # (N, Te)
    attNormE = jnp.dot(normT_ref[...], gather_rows,
                       preferred_element_type=jnp.float32)              # (H, Te)
    att = expAtt * pl.reciprocal(attNormE + 1e-8, approx=True)
    attT_ref[...] = att                                                 # lane-dense store

    # Head-broadcast via the transposed block-diagonal mask, then one VPU multiply.
    d = emb // heads
    headMT = _head_mask(emb, heads, d, jnp.float32)                     # (E, H)
    attE = jnp.dot(headMT, att, preferred_element_type=jnp.float32)     # (E, Te)
    resEdgeT = attE * vT_ref[...]                                       # f32 * bf16 -> f32

    # resEmbeds^T[:, n] += sum_{e: rows[e]==n} att*v  via one-hot matmul (bf16 MXU).
    scatter_rows = _scatter_onehot(rows_c_ref, n_nodes, jnp.bfloat16)   # (Te, N)
    resT_ref[0] = resT_ref[0] + jnp.dot(resEdgeT.astype(jnp.bfloat16), scatter_rows,
                                        preferred_element_type=jnp.float32)


def gt_layer_forward(rows, cols, embeds, qW, kW, vW, num_heads,
                     tile_edges=512, num_cores=2):
    """Pallas TPU forward of GTLayer. Returns (resEmbeds [N,E], att [Ne,H])."""
    N, E = embeds.shape
    Ne = int(rows.shape[0])
    H = int(num_heads)
    Te = int(tile_edges)
    assert E % H == 0
    assert Te % 128 == 0, "edge tile must be a multiple of 128 lanes"

    total_tiles = max((Ne + Te - 1) // Te, 1)
    total_tiles = _round_up(total_tiles, num_cores)
    nT = total_tiles // num_cores                 # edge tiles per core
    Ne_pad = total_tiles * Te
    pad = Ne_pad - Ne

    rows_i = jnp.pad(rows.astype(jnp.int32), (0, pad))
    cols_i = jnp.pad(cols.astype(jnp.int32), (0, pad))
    rows_row = rows_i.reshape(1, Ne_pad)          # lane layout   (gather one-hot)
    rows_col = rows_i.reshape(Ne_pad, 1)          # sublane layout (scatter one-hot)
    cols_row = cols_i.reshape(1, Ne_pad)

    # Projection hoist: node-level q/k/v in f32 (plain XLA), rounded once to bf16 and
    # stored feature-major so the in-kernel gathers are (feat, N) @ (N, Te) matmuls.
    emb_f = embeds.astype(jnp.float32)
    nodeQ = emb_f @ qW.astype(jnp.float32)                               # (N, E)
    nodeK = emb_f @ kW.astype(jnp.float32)
    nodeV = emb_f @ vW.astype(jnp.float32)
    nodeQT = nodeQ.T.astype(jnp.bfloat16)                                # (E,  N)
    nodeKVT = jnp.concatenate([nodeK, nodeV], axis=1).T.astype(jnp.bfloat16)  # (2E, N)

    cparams = pltpu.CompilerParams(
        dimension_semantics=("parallel", "arbitrary"),
        vmem_limit_bytes=64 * 1024 * 1024)

    k1 = functools.partial(gt_attention_kernel, n_nodes=N, n_edges=Ne,
                           emb=E, heads=H, tile=Te, tiles_per_core=nT)
    expT, vT, norm_parts = pl.pallas_call(
        k1,
        out_shape=(jax.ShapeDtypeStruct((H, Ne_pad), jnp.float32),
                   jax.ShapeDtypeStruct((E, Ne_pad), jnp.bfloat16),
                   jax.ShapeDtypeStruct((num_cores, H, N), jnp.float32)),
        grid_spec=pltpu.PrefetchScalarGridSpec(
            num_scalar_prefetch=0,
            grid=(num_cores, nT),
            in_specs=[
                pl.BlockSpec((1, Te), lambda c, t: (0, c * nT + t)),    # rows (lane)
                pl.BlockSpec((Te, 1), lambda c, t: (c * nT + t, 0)),    # rows (sublane)
                pl.BlockSpec((1, Te), lambda c, t: (0, c * nT + t)),    # cols (lane)
                pl.BlockSpec((E, N), lambda c, t: (0, 0)),              # nodeQ^T resident
                pl.BlockSpec((2 * E, N), lambda c, t: (0, 0)),          # nodeK||V^T resident
            ],
            out_specs=[
                pl.BlockSpec((H, Te), lambda c, t: (0, c * nT + t)),    # expAtt^T
                pl.BlockSpec((E, Te), lambda c, t: (0, c * nT + t)),    # v^T (bf16)
                pl.BlockSpec((1, H, N), lambda c, t: (c, 0, 0)),        # attNorm^T partial
            ]),
        compiler_params=cparams,
    )(rows_row, rows_col, cols_row, nodeQT, nodeKVT)

    attNormT = norm_parts.sum(axis=0)                                   # (H, N) full norm

    k2 = functools.partial(gt_aggregate_kernel, n_nodes=N, n_edges=Ne,
                           emb=E, heads=H, tile=Te, tiles_per_core=nT)
    attT, res_parts = pl.pallas_call(
        k2,
        out_shape=(jax.ShapeDtypeStruct((H, Ne_pad), jnp.float32),
                   jax.ShapeDtypeStruct((num_cores, E, N), jnp.float32)),
        grid_spec=pltpu.PrefetchScalarGridSpec(
            num_scalar_prefetch=0,
            grid=(num_cores, nT),
            in_specs=[
                pl.BlockSpec((1, Te), lambda c, t: (0, c * nT + t)),    # rows (lane)
                pl.BlockSpec((Te, 1), lambda c, t: (c * nT + t, 0)),    # rows (sublane)
                pl.BlockSpec((H, Te), lambda c, t: (0, c * nT + t)),    # expAtt^T
                pl.BlockSpec((E, Te), lambda c, t: (0, c * nT + t)),    # v^T
                pl.BlockSpec((H, N), lambda c, t: (0, 0)),              # attNorm^T resident
            ],
            out_specs=[
                pl.BlockSpec((H, Te), lambda c, t: (0, c * nT + t)),    # att^T
                pl.BlockSpec((1, E, N), lambda c, t: (c, 0, 0)),        # res^T partial
            ]),
        compiler_params=cparams,
    )(rows_row, rows_col, expT, vT, attNormT)

    res = res_parts.sum(axis=0).T                                       # (N, E)
    att = attT[:, :Ne].T                                                # (Ne, H)
    return res, att


def gt_layer_reference(rows, cols, embeds, qW, kW, vW, H):
    # pure-JAX f32 reference mirroring the PyTorch forward exactly
    N, E = embeds.shape
    d = E // H
    rowE = embeds[rows]
    colE = embeds[cols]
    q = (rowE @ qW).reshape(-1, H, d)
    k = (colE @ kW).reshape(-1, H, d)
    v = (colE @ vW).reshape(-1, H, d)
    att = jnp.einsum('ehd,ehd->eh', q, k)
    att = jnp.clip(att, -10.0, 10.0)
    expAtt = jnp.exp(att)
    attNorm = jnp.zeros((N, H), jnp.float32).at[rows].add(expAtt)[rows]
    att = expAtt / (attNorm + 1e-8)
    res = (att[:, :, None] * v).reshape(-1, E)
    res = jnp.zeros((N, E), jnp.float32).at[rows].add(res)
    return res, att


def xavier_uniform(key, shape):
    fan_in, fan_out = shape
    a = float(np.sqrt(6.0 / (fan_in + fan_out)))
    return jax.random.uniform(key, shape, jnp.float32, minval=-a, maxval=a)


if __name__ == "__main__":
    # config: embedding_size=32, head=4 ; graph with N=64 nodes, Ne=300 edges.
    # tile_edges=128, num_cores=2 -> grid (2, 2) with a padded tail tile: exercises
    # the parallel core split, tiling, tail masking, and the resident accumulators.
    E, H, N, Ne = 32, 4, 64, 300

    key = jax.random.PRNGKey(0)
    k_q, k_k, k_v, k_emb, k_r, k_c = jax.random.split(key, 6)

    qW = xavier_uniform(k_q, (E, E))
    kW = xavier_uniform(k_k, (E, E))
    vW = xavier_uniform(k_v, (E, E))
    embeds = jax.random.normal(k_emb, (N, E), jnp.float32)
    rows = jax.random.randint(k_r, (Ne,), 0, N)
    cols = jax.random.randint(k_c, (Ne,), 0, N)

    res, att = gt_layer_forward(rows, cols, embeds, qW, kW, vW, H,
                                tile_edges=128, num_cores=2)
    jax.block_until_ready((res, att))

    res_ref, att_ref = gt_layer_reference(rows, cols, embeds, qW, kW, vW, H)
    # bf16 MXU operands + approx reciprocal -> loosened tolerance vs the f32 reference.
    np.testing.assert_allclose(np.asarray(att), np.asarray(att_ref), rtol=5e-2, atol=5e-2)
    np.testing.assert_allclose(np.asarray(res), np.asarray(res_ref), rtol=5e-2, atol=5e-2)

    print("KERNEL_OK")
</pallas_src>

<mosaic_0001>
module attributes {stable_mosaic.version = 11 : i64} {
  func.func @gt_attention_kernel(%arg0: i32, %arg1: i32, %arg2: memref<1x128xi32, #tpu.memory_space<vmem>>, %arg3: memref<128x1xi32, #tpu.memory_space<vmem>>, %arg4: memref<1x128xi32, #tpu.memory_space<vmem>>, %arg5: memref<32x64xbf16, #tpu.memory_space<vmem>>, %arg6: memref<64x64xbf16, #tpu.memory_space<vmem>>, %arg7: memref<4x128xf32, #tpu.memory_space<vmem>>, %arg8: memref<32x128xbf16, #tpu.memory_space<vmem>>, %arg9: memref<1x4x64xf32, #tpu.memory_space<vmem>>) attributes {dimension_semantics = [#tpu.dimension_semantics<parallel>, #tpu.dimension_semantics<arbitrary>], iteration_bounds = array<i64: 2, 2>, scalar_prefetch = 0 : i64, scratch_operands = 0 : i64, tpu.core_type = #tpu.core_type<tc>, window_params = [{transform_indices = @transform_0, window_bounds = array<i64: 1, 128>}, {transform_indices = @transform_1, window_bounds = array<i64: 128, 1>}, {transform_indices = @transform_2, window_bounds = array<i64: 1, 128>}, {pipeline_mode = #tpu.pipeline_mode<synchronous>, transform_indices = @transform_3, window_bounds = array<i64: 32, 64>}, {pipeline_mode = #tpu.pipeline_mode<synchronous>, transform_indices = @transform_4, window_bounds = array<i64: 64, 64>}, {transform_indices = @transform_5, window_bounds = array<i64: 4, 128>}, {transform_indices = @transform_6, window_bounds = array<i64: 32, 128>}, {transform_indices = @transform_7, window_bounds = array<i64: 1, 4, 64>}]} {
    %c2_i32 = arith.constant 2 : i32
    %0 = arith.muli %arg0, %c2_i32 : i32
    %1 = arith.addi %0, %arg1 : i32
    %c128_i32 = arith.constant 128 : i32
    %2 = arith.muli %1, %c128_i32 : i32
    %c0_i32 = arith.constant 0 : i32
    %3 = arith.cmpi eq, %arg1, %c0_i32 : i32
    %4 = arith.extui %3 : i1 to i32
    %c0_i32_0 = arith.constant 0 : i32
    %5 = arith.cmpi ne, %4, %c0_i32_0 : i32
    scf.if %5 {
      %cst_27 = arith.constant 0.000000e+00 : f32
      %69 = vector.broadcast %cst_27 : f32 to vector<1x4x64xf32>
      %c0_28 = arith.constant 0 : index
      %c0_29 = arith.constant 0 : index
      %c0_30 = arith.constant 0 : index
      %70 = vector.load %arg9[%c0_28, %c0_29, %c0_30] : memref<1x4x64xf32, #tpu.memory_space<vmem>>, vector<1x4x64xf32>
      tpu.vector_store %arg9[%c0_28, %c0_29, %c0_30], %69 {strides = array<i32>} : memref<1x4x64xf32, #tpu.memory_space<vmem>>, vector<1x4x64xf32>,
    } else {
    }
    %c0 = arith.constant 0 : index
    %c0_1 = arith.constant 0 : index
    %6 = vector.load %arg2[%c0, %c0_1] : memref<1x128xi32, #tpu.memory_space<vmem>>, vector<1x128xi32>
    %7 = tpu.iota {dimensions = array<i32: 0>} : vector<64x128xi32>
    %8 = vector.broadcast %6 : vector<1x128xi32> to vector<64x128xi32>
    %9 = arith.cmpi eq, %7, %8 : vector<64x128xi32>
    %10 = arith.extui %9 : vector<64x128xi1> to vector<64x128xi32>
    %11 = arith.sitofp %10 : vector<64x128xi32> to vector<64x128xf32>
    %12 = arith.truncf %11 : vector<64x128xf32> to vector<64x128xbf16>
    %c0_2 = arith.constant 0 : index
    %c0_3 = arith.constant 0 : index
    %13 = vector.load %arg4[%c0_2, %c0_3] : memref<1x128xi32, #tpu.memory_space<vmem>>, vector<1x128xi32>
    %14 = tpu.iota {dimensions = array<i32: 0>} : vector<64x128xi32>
    %15 = vector.broadcast %13 : vector<1x128xi32> to vector<64x128xi32>
    %16 = arith.cmpi eq, %14, %15 : vector<64x128xi32>
    %17 = arith.extui %16 : vector<64x128xi1> to vector<64x128xi32>
    %18 = arith.sitofp %17 : vector<64x128xi32> to vector<64x128xf32>
    %19 = arith.truncf %18 : vector<64x128xf32> to vector<64x128xbf16>
    %c0_4 = arith.constant 0 : index
    %c0_5 = arith.constant 0 : index
    %20 = vector.load %arg5[%c0_4, %c0_5] : memref<32x64xbf16, #tpu.memory_space<vmem>>, vector<32x64xbf16>
    %cst = arith.constant dense<0.000000e+00> : vector<32x128xf32>
    %21 = tpu.matmul %20, %12, %cst {dimension_numbers = #tpu.dot_dimension_numbers<[1], [0], [0], [1], [0, 0, 1, 1], [], []>} : vector<32x64xbf16>, vector<64x128xbf16>, vector<32x128xf32> -> vector<32x128xf32>
    %c0_6 = arith.constant 0 : index
    %c0_7 = arith.constant 0 : index
    %22 = vector.load %arg6[%c0_6, %c0_7] : memref<64x64xbf16, #tpu.memory_space<vmem>>, vector<64x64xbf16>
    %cst_8 = arith.constant dense<0.000000e+00> : vector<64x128xf32>
    %23 = tpu.matmul %22, %19, %cst_8 {dimension_numbers = #tpu.dot_dimension_numbers<[1], [0], [0], [1], [0, 0, 1, 1], [], []>} : vector<64x64xbf16>, vector<64x128xbf16>, vector<64x128xf32> -> vector<64x128xf32>
    %24 = vector.extract_strided_slice %23 {offsets = [0, 0], sizes = [32, 128], strides = [1, 1]} : vector<64x128xf32> to vector<32x128xf32>
    %25 = vector.extract_strided_slice %23 {offsets = [32, 0], sizes = [32, 128], strides = [1, 1]} : vector<64x128xf32> to vector<32x128xf32>
    %26 = tpu.iota {dimensions = array<i32: 0>} : vector<4x32xi32>
    %27 = tpu.iota {dimensions = array<i32: 1>} : vector<4x32xi32>
    %c8_i32 = arith.constant 8 : i32
    %28 = vector.broadcast %c8_i32 : i32 to vector<4x32xi32>
    %29 = arith.muli %26, %28 : vector<4x32xi32>
    %30 = arith.cmpi sge, %27, %29 : vector<4x32xi32>
    %c8_i32_9 = arith.constant 8 : i32
    %31 = vector.broadcast %c8_i32_9 : i32 to vector<4x32xi32>
    %32 = arith.addi %29, %31 : vector<4x32xi32>
    %33 = arith.cmpi slt, %27, %32 : vector<4x32xi32>
    %34 = arith.andi %30, %33 : vector<4x32xi1>
    %35 = arith.extui %34 : vector<4x32xi1> to vector<4x32xi32>
    %36 = arith.sitofp %35 : vector<4x32xi32> to vector<4x32xf32>
    %37 = arith.mulf %21, %24 : vector<32x128xf32>
    %cst_10 = arith.constant dense<0.000000e+00> : vector<4x128xf32>
    %38 = tpu.matmul %36, %37, %cst_10 {dimension_numbers = #tpu.dot_dimension_numbers<[1], [0], [0], [1], [0, 0, 1, 1], [], []>} : vector<4x32xf32>, vector<32x128xf32>, vector<4x128xf32> -> vector<4x128xf32>
    %39 = tpu.iota {dimensions = array<i32: 1>} : vector<1x128xi32>
    %40 = vector.broadcast %2 : i32 to vector<1x128xi32>
    %41 = arith.addi %40, %39 : vector<1x128xi32>
    %c300_i32 = arith.constant 300 : i32
    %42 = vector.broadcast %c300_i32 : i32 to vector<1x128xi32>
    %43 = arith.cmpi slt, %41, %42 : vector<1x128xi32>
    %cst_11 = arith.constant -1.000000e+01 : f32
    %cst_12 = arith.constant 1.000000e+01 : f32
    %44 = vector.broadcast %cst_11 : f32 to vector<4x128xf32>
    %45 = arith.maximumf %44, %38 : vector<4x128xf32>
    %46 = vector.broadcast %cst_12 : f32 to vector<4x128xf32>
    %47 = arith.minimumf %46, %45 : vector<4x128xf32>
    %48 = math.exp %47 : vector<4x128xf32>
    %cst_13 = arith.constant 0.000000e+00 : f32
    %49 = vector.shape_cast %43 : vector<1x128xi1> to vector<1x128xi1>
    %50 = vector.broadcast %49 : vector<1x128xi1> to vector<4x128xi1>
    %51 = vector.broadcast %cst_13 : f32 to vector<4x128xf32>
    %52 = arith.select %50, %48, %51 : vector<4x128xi1>, vector<4x128xf32>
    %c0_14 = arith.constant 0 : index
    %c0_15 = arith.constant 0 : index
    %53 = vector.load %arg7[%c0_14, %c0_15] : memref<4x128xf32, #tpu.memory_space<vmem>>, vector<4x128xf32>
    tpu.vector_store %arg7[%c0_14, %c0_15], %52 {strides = array<i32>} : memref<4x128xf32, #tpu.memory_space<vmem>>, vector<4x128xf32>,
    %54 = arith.truncf %25 : vector<32x128xf32> to vector<32x128xbf16>
    %c0_16 = arith.constant 0 : index
    %c0_17 = arith.constant 0 : index
    %55 = vector.load %arg8[%c0_16, %c0_17] : memref<32x128xbf16, #tpu.memory_space<vmem>>, vector<32x128xbf16>
    tpu.vector_store %arg8[%c0_16, %c0_17], %54 {strides = array<i32>} : memref<32x128xbf16, #tpu.memory_space<vmem>>, vector<32x128xbf16>,
    %c0_18 = arith.constant 0 : index
    %c0_19 = arith.constant 0 : index
    %56 = vector.load %arg3[%c0_18, %c0_19] : memref<128x1xi32, #tpu.memory_space<vmem>>, vector<128x1xi32>
    %57 = tpu.iota {dimensions = array<i32: 1>} : vector<128x64xi32>
    %58 = vector.broadcast %56 : vector<128x1xi32> to vector<128x64xi32>
    %59 = arith.cmpi eq, %57, %58 : vector<128x64xi32>
    %60 = arith.extui %59 : vector<128x64xi1> to vector<128x64xi32>
    %61 = arith.sitofp %60 : vector<128x64xi32> to vector<128x64xf32>
    %c0_20 = arith.constant 0 : index
    %c0_21 = arith.constant 0 : index
    %c0_22 = arith.constant 0 : index
    %62 = vector.load %arg9[%c0_20, %c0_21, %c0_22] : memref<1x4x64xf32, #tpu.memory_space<vmem>>, vector<1x4x64xf32>
    %63 = vector.shape_cast %62 : vector<1x4x64xf32> to vector<4x64xf32>
    %cst_23 = arith.constant dense<0.000000e+00> : vector<4x64xf32>
    %64 = tpu.matmul %52, %61, %cst_23 {dimension_numbers = #tpu.dot_dimension_numbers<[1], [0], [0], [1], [0, 0, 1, 1], [], []>} : vector<4x128xf32>, vector<128x64xf32>, vector<4x64xf32> -> vector<4x64xf32>
    %65 = arith.addf %63, %64 : vector<4x64xf32>
    %c0_24 = arith.constant 0 : index
    %c0_25 = arith.constant 0 : index
    %c0_26 = arith.constant 0 : index
    %66 = vector.load %arg9[%c0_24, %c0_25, %c0_26] : memref<1x4x64xf32, #tpu.memory_space<vmem>>, vector<1x4x64xf32>
    %67 = vector.shape_cast %66 : vector<1x4x64xf32> to vector<4x64xf32>
    %68 = vector.shape_cast %65 : vector<4x64xf32> to vector<1x4x64xf32>
    tpu.vector_store %arg9[%c0_24, %c0_25, %c0_26], %68 {strides = array<i32>} : memref<1x4x64xf32, #tpu.memory_space<vmem>>, vector<1x4x64xf32>,
    return
  }
  func.func @transform_0(%arg0: i32, %arg1: i32) -> (i32, i32) {
    %c2_i32 = arith.constant 2 : i32
    %0 = arith.muli %arg0, %c2_i32 : i32
    %1 = arith.addi %0, %arg1 : i32
    %c0_i32 = arith.constant 0 : i32
    %c0_i32_0 = arith.constant 0 : i32
    return %c0_i32, %1 : i32, i32
  }
  func.func @transform_1(%arg0: i32, %arg1: i32) -> (i32, i32) {
    %c2_i32 = arith.constant 2 : i32
    %0 = arith.muli %arg0, %c2_i32 : i32
    %1 = arith.addi %0, %arg1 : i32
    %c0_i32 = arith.constant 0 : i32
    %c0_i32_0 = arith.constant 0 : i32
    return %1, %c0_i32 : i32, i32
  }
  func.func @transform_2(%arg0: i32, %arg1: i32) -> (i32, i32) {
    %c2_i32 = arith.constant 2 : i32
    %0 = arith.muli %arg0, %c2_i32 : i32
    %1 = arith.addi %0, %arg1 : i32
    %c0_i32 = arith.constant 0 : i32
    %c0_i32_0 = arith.constant 0 : i32
    return %c0_i32, %1 : i32, i32
  }
  func.func @transform_3(%arg0: i32, %arg1: i32) -> (i32, i32) {
    %c0_i32 = arith.constant 0 : i32
    %c0_i32_0 = arith.constant 0 : i32
    %c0_i32_1 = arith.constant 0 : i32
    return %c0_i32, %c0_i32_0 : i32, i32
  }
  func.func @transform_4(%arg0: i32, %arg1: i32) -> (i32, i32) {
    %c0_i32 = arith.constant 0 : i32
    %c0_i32_0 = arith.constant 0 : i32
    %c0_i32_1 = arith.constant 0 : i32
    return %c0_i32, %c0_i32_0 : i32, i32
  }
  func.func @transform_5(%arg0: i32, %arg1: i32) -> (i32, i32) {
    %c2_i32 = arith.constant 2 : i32
    %0 = arith.muli %arg0, %c2_i32 : i32
    %1 = arith.addi %0, %arg1 : i32
    %c0_i32 = arith.constant 0 : i32
    %c0_i32_0 = arith.constant 0 : i32
    return %c0_i32, %1 : i32, i32
  }
  func.func @transform_6(%arg0: i32, %arg1: i32) -> (i32, i32) {
    %c2_i32 = arith.constant 2 : i32
    %0 = arith.muli %arg0, %c2_i32 : i32
    %1 = arith.addi %0, %arg1 : i32
    %c0_i32 = arith.constant 0 : i32
    %c0_i32_0 = arith.constant 0 : i32
    return %c0_i32, %1 : i32, i32
  }
  func.func @transform_7(%arg0: i32, %arg1: i32) -> (i32, i32, i32) {
    %c0_i32 = arith.constant 0 : i32
    %c0_i32_0 = arith.constant 0 : i32
    %c0_i32_1 = arith.constant 0 : i32
    return %arg0, %c0_i32, %c0_i32_0 : i32, i32, i32
  }
}

</mosaic_0001>

<bundles_post_ra>
// kernel: tpu_custom_call.1
= control target key start
LH: loop header
LB: loop body
LE: loop exit
PB: predicated region body
PF: predicated region fallthrough
CT: control target
= control target key end

     0   :  { %s2703_s0 = inlined_call_operand.hbm [shape: s32[1,512], index: 0, kind: input, shape index: {}]   ;;  %s2704_s1 = inlined_call_operand.hbm [shape: s32[512,1], index: 1, kind: input, shape index: {}]   ;;  %s2705_s2 = inlined_call_operand.hbm [shape: s32[1,512], index: 2, kind: input, shape index: {}]   ;;  %s2706_s3 = inlined_call_operand.hbm [shape: bf16[32,64], index: 3, kind: input, shape index: {}]   ;;  %s2707_s4 = inlined_call_operand.hbm [shape: bf16[64,64], index: 4, kind: input, shape index: {}]   ;;  %s2708_s5 = inlined_call_operand.hbm [shape: f32[4,512], index: 5, kind: output, shape index: {0}]   ;;  %s2709_s6 = inlined_call_operand.hbm [shape: bf16[32,512], index: 6, kind: output, shape index: {1}]   ;;  %s2710_s7 = inlined_call_operand.hbm [shape: f32[2,4,64], index: 7, kind: output, shape index: {2}]  }
   0x1   :  { %2745 = sst [smem:[#allocation33_spill]] %s2703_s0 }
   0x2   :  { %2746 = sst [smem:[#allocation34_spill]] %s2704_s1 }
   0x3   :  { %2747 = sst [smem:[#allocation35_spill]] %s2706_s3 }
   0x4   :  { %2748 = sst [smem:[#allocation36_spill]] %s2708_s5 }
   0x5   :  { %2749 = sst [smem:[#allocation37_spill]] %s2709_s6 }
   0x6   :  { %2750 = sst [smem:[#allocation38_spill]] %s2710_s7 }
   0x7   :  { %13 = vsyncpa [#allocation3], 0 }
   0x8   :  { %15 = vsyncpa [#allocation3 + $0x1], 0 }
   0x9   :  { %16 = vsyncpa [#allocation6], 0 }
   0xa   :  { %18 = vsyncpa [#allocation6 + $0x1], 0 }
   0xb   :  { %19 = vsyncpa [#allocation9], 0 }
   0xc   :  { %20 = vsyncpa [#allocation4], 0 }
   0xd   :  { %22 = vsyncpa [#allocation4 + $0x1], 0 }
   0xe   :  { %23 = vsyncpa [#allocation13], 0 }
   0xf   :  { %25 = vsyncpa [#allocation13 + $0x1], 0  ;;  %s2141_s24 = smov 0   ;;  %s2143_s25 = smov 0  }
  0x10   :  { %s2145_s26 = smov 0   ;;  %s2147_s27 = smov 0  }
  0x11   :  { %s2149_s28 = smov 0   ;;  %s2151_s29 = smov 0  }
  0x12   :  { %s2153_s30 = smov 0   ;;  %s2155_s8 = smov 0  }
  0x13   :  { %s2157_s9 = smov 0   ;;  %s2159_s10 = smov 0  }
  0x14   :  { %s2161_s11 = smov 0  }
  0x15 LB: > { %2751 = sst [smem:[#allocation21_spill]] %s2042_s25  ;;  %s2195_s12 = sadd.s32 4294967295, %s2078_s11   ;;  %s2078_s11 = sphi %s2161_s11, %s2826_s11   ;;  %s2074_s10 = sphi %s2159_s10, %s2825_s10   ;;  %s2070_s9 = sphi %s2157_s9, %s2817_s9   ;;  %s2066_s8 = sphi %s2155_s8, %s2824_s8   ;;  %s2062_s30 = sphi %s2153_s30, %s2816_s30   ;;  %s2058_s29 = sphi %s2151_s29, %s2823_s29   ;;  %s2054_s28 = sphi %s2149_s28, %s2822_s28   ;;  %s2050_s27 = sphi %s2147_s27, %s2821_s27   ;;  %s2046_s26 = sphi %s2145_s26, %s2820_s26   ;;  %s2042_s25 = sphi %s2143_s25, %s2819_s25   ;;  %s2038_s24 = sphi %s2141_s24, %s2815_s24  }
  0x16   : > { %2752 = sst [smem:[#allocation22_spill]] %s2050_s27  ;;  %s2712_s13 = sadd.s32 4294967294, %s2078_s11  }
  0x17   : > { %2753 = sst [smem:[#allocation23_spill]] %s2062_s30  ;;  %p61_p0 = scmp.ne.s32.totalorder %s2058_s29, %s2054_s28 }
  0x18   : > { %2754 = sst [smem:[#allocation24_spill]] %s2066_s8  ;;  %p62_p1 = scmp.eq.s32.totalorder %s2078_s11, 0 }
  0x19   : > { %2755 = sst [smem:[#allocation25_spill]] %s2070_s9  ;;  %p67_p2 = scmp.ne.s32.totalorder %s2054_s28, %s2050_s27 }
  0x1a   : > { %2756 = sst [smem:[#allocation26_spill]] %s2078_s11  ;;  %p2711_p3 = scmp.eq.s32.totalorder %s2195_s12, 0 }
  0x1b   : > { %p2204_p4 = por %p62_p1, %p61_p0  ;;  %p197_p5 = scmp.eq.s32.totalorder %s2195_s12, 3 }
  0x1c   : > { %p2211_p6 = por %p2711_p3, %p67_p2  ;;  %p203_p7 = scmp.eq.s32.totalorder %s2712_s13, 3 }
  0x1d   : > { %s2757_s14 = scalar_select %p2204_p4, 1, 0 }
  0x1e   : > { %s2758_s15 = scalar_select %p2211_p6, 1, 0 }
  0x1f   : > { %p2217_p8 = por %p197_p5, %p61_p0  ;;  %p2222_p9 = por %p203_p7, %p67_p2 }
  0x20   : > { %p252_p10 = scmp.ne.s32.totalorder %s2046_s26, %s2042_s25  ;;  %p258_p11 = scmp.ne.s32.totalorder %s2042_s25, %s2038_s24 }
  0x21   : > { %s2759_s16 = scalar_select %p2217_p8, 1, 0 }
  0x22   : > { %s2761_s18 = scalar_select %p2222_p9, 1, 0 }
  0x23   : > { %2760 = sst [smem:[#allocation27_spill]] %s2759_s16  ;;  %p1298_p12 = scmp.ge.s32.totalorder %s2078_s11, 1 }
  0x24   : > { %2762 = sst [smem:[#allocation28_spill]] %s2761_s18  ;;  %p2230_p13 = por %p252_p10, %p197_p5 }
  0x25   : > { %p266_p1 = scmp.lt.s32.totalorder %s2078_s11, 5  ;;  %p2235_p3 = por %p258_p11, %p203_p7 }
  0x26   : > { %s2763_s19 = scalar_select %p2230_p13, 1, 0 }
  0x27   : > { %s2765_s20 = scalar_select %p2235_p3, 1, 0 }
  0x28   : > { %2764 = sst [smem:[#allocation29_spill]] %s2763_s19  ;;  %p2239_p0 = pnand %p1298_p12, %p266_p1 }
  0x29   : > { %2766 = sst [smem:[#allocation30_spill]] %s2765_s20  ;;  %s2080_s22 = smov [#allocation8]  }
  0x2a   : > { %s2767_s21 = scalar_select %p2239_p0, 1, 0 }
  0x2b   : > { %s278_s23 = sshll.u32 %s2080_s22, 4  ;;  %p1592_p2 = pneg %p2239_p0  ;;  %s279_s23 = int_to_ptr.vmem [resolvable:$true] %s278_s23 }
  0x2c   : > { %p2768_p9 = scmp.eq.s32.totalorder %s2195_s12, 0  ;;  %s2770_s3 = sld [smem:[#allocation35_spill]] }
  0x2e   : > { %p2247_p5 = pnand %p1592_p2, %p2768_p9 }
  0x30   : > { %s2769_s24 = scalar_select %p2247_p5, 1, 0 }
  0x31   : > { %p2735_p10 = pneg %p2247_p5 }
  0x32   : > { %s1738_s20 = scalar_lea.hbm %s2770_s3, 256 }
  0x33   : > { %p1739_p7 = scmp.ne.s32.totalorder %s2770_s3, %s1738_s20  ;;  %p1745_p9 = scmp.lt.u32.totalorder %s1738_s20, %s2770_s3 }
  0x35   : > { %p1741_p11 = pnand %p2735_p10, %p1739_p7 }
  0x37   : > { %p1742_p12 = pneg %p1741_p11 }
  0x39   : > { %p1747_p1 = pnand %p1745_p9, %p1742_p12 }
  0x3b   : > { %1750 = shalt.err (!%p1747_p1)
}
  0x3c   : > { %s1751_s13 = scalar_lea.vmem %s279_s23, 256  ;;  %p1759_p8 = scmp.lt.s32.totalorder %s279_s23, %s279_s23 }
  0x3d   : > { %p1752_p2 = scmp.ne.s32.totalorder %s279_s23, %s1751_s13  ;;  %p1760_p6 = scmp.lt.s32.totalorder %s1751_s13, %s1751_s13 }
  0x3f   : > { %p1754_p3 = pnand %p1752_p2, %p2735_p10  ;;  %p1761_p0 = por %p1760_p6, %p1759_p8 }
  0x41   : > { %p1755_p13 = pneg %p1754_p3 }
  0x43   : > { %p1762_p4 = pnand %p1761_p0, %p1755_p13 }
  0x45   : > { %1765 = shalt.err (!%p1762_p4)
}
  0x46   : > { %s2724_s27 = smov 64   ;;  %s2725_s7 = smov 4  }
  0x47   : > { %1595 = dma.hbm_to_vmem [thread:$0]  (!%p2247_p5), %s2770_s3, 256, %s279_s23, [#allocation9], %s2724_s27, %s2724_s27, %s2725_s7  }
  0x48   : > { %s40_s20 = sadd.s32 1, %s2070_s9  ;;  %s43_s22 = sadd.s32 1, %s2074_s10 }
  0x49   : > { %p41_p3 = scmp.ge.s32.totalorder %s40_s20, 2  ;;  %s1288_s13 = sshll.u32 %s2074_s10, 1 }
  0x4a   : > { %s2280_s19 = sadd.s32 %s2070_s9, %s1288_s13  ;;  %s54_s5 = sadd.s32 1, %s2058_s29 }
  0x4b   : > { %s2828_s20 = smov (%p41_p3, %s40_s20), 0  ;;  %s2830_s22 = smov (!%p41_p3, %s43_s22), %s2074_s10 }
  0x4c   : > { %2771 = sst [smem:[#allocation31_spill]] %s2828_s20  ;;  %p1621_p4 = scmp.lt.s32.totalorder %s2078_s11, 4 }
  0x4d   : > { %s2288_s17 = sand.u32 1, %s2058_s29   ;;  %p45_p6 = scmp.ge.s32.totalorder %s2830_s22, 2 }
  0x4e   : > { %s324_s23 = sand.u32 1, %s2078_s11   ;;  %p2772_p8 = scmp.ne.s32.totalorder %s2757_s14, 0 }
  0x4f   : > { %s2832_s22 = smov (%p45_p6, %s2830_s22), 0  ;;  %s1304_s13 = sshll.u32 %s2288_s17, 7 }
  0x50   : > { %p2293_p13 = pnand %p1621_p4, %p2772_p8  ;;  %2774 = sst [smem:[#allocation32_spill]] %s2832_s22 }
  0x51   : > { %s1289_s27 = sshll.u32 %s2832_s22, 1  ;;  %s239_s7 = ssub.s32 %s2074_s10, %s2832_s22 }
  0x52   : > { %s2773_s18 = scalar_select %p2293_p13, 1, 0 }
  0x53   : > { %s50_s3 = sadd.s32 %s1289_s27, %s2828_s20  ;;  %p240_p0 = scmp.eq.s32.totalorder %s239_s7, 0 }
  0x54   : > { %s51_s9 = ssub.s32 %s2280_s19, %s50_s3  ;;  %s1416_s6 = sshll.u32 %s2280_s19, 11 }
  0x55   : > { %p52_p7 = scmp.eq.s32.totalorder %s51_s9, 0  ;;  %s2775_s16 = sadd.s32 1, %s2046_s26 }
  0x56   : > { %s2309_s11 = scalar_select %p240_p0, %s2046_s26, %s2775_s16  }
  0x57   : > { %s2312_s14 = scalar_select %p52_p7, %s2058_s29, %s54_s5  }
  0x58   : > { %s2776_s1 = sld [smem:[#allocation34_spill]]  ;;  %s328_s22 = scalar_lea.vmem [#allocation5], %s1304_s13 }
  0x59   : > { %s337_s27 = sshll.u32 %s328_s22, 4  ;;  %s2321_s3 = scalar_lea.sflag [#allocation6], %s324_s23  ;;  %s2319_s27 = int_to_ptr.vmem [resolvable:$true] %s337_s27 }
  0x5a   : > { %p2327_p12 = pneg %p2293_p13 }
  0x5c   : > { %s2777_s5 = scalar_select %p2327_p12, 1, 0 }
  0x5e   : > { %s2317_s25 = scalar_lea.hbm %s2776_s1, %s1416_s6  ;;  %s1771_s8 = scalar_lea.hbm %s2776_s1, 8192 }
  0x5f   : > { %s1766_s9 = scalar_lea.hbm %s2317_s25, 2048  ;;  %p1772_p2 = scmp.lt.u32.totalorder %s2317_s25, %s2776_s1 }
  0x60   : > { %p1767_p11 = scmp.ne.s32.totalorder %s2317_s25, %s1766_s9  ;;  %p1773_p3 = scmp.lt.u32.totalorder %s1771_s8, %s1766_s9 }
  0x61   : > { %p1775_p6 = scmp.lt.u32.totalorder %s1766_s9, %s2317_s25 }
  0x62   : > { %p1769_p9 = pnand %p2327_p12, %p1767_p11  ;;  %p1774_p4 = por %p1773_p3, %p1772_p2 }
  0x64   : > { %p1770_p1 = pneg %p1769_p9  ;;  %p1776_p8 = por %p1775_p6, %p1774_p4 }
  0x66   : > { %p1777_p0 = pnand %p1776_p8, %p1770_p1 }
  0x68   : > { %1780 = shalt.err (!%p1777_p0)
}
  0x69   : > { %s1781_s22 = scalar_lea.vmem %s2319_s27, 2048  ;;  %s2083_s23 = smov [#allocation5]  }
  0x6a   : > { %p1782_p7 = scmp.ne.s32.totalorder %s2319_s27, %s1781_s22  ;;  %s1786_s13 = sshll.u32 %s2083_s23, 4  ;;  %s1787_s13 = int_to_ptr.vmem [resolvable:$false] %s1786_s13 }
  0x6b   : > { %s1788_s6 = scalar_lea.vmem %s1787_s13, 4096  ;;  %p1789_p10 = scmp.lt.s32.totalorder %s2319_s27, %s1787_s13 }
  0x6c   : > { %p1784_p11 = pnand %p1782_p7, %p2327_p12  ;;  %p1790_p5 = scmp.lt.s32.totalorder %s1788_s6, %s1781_s22 }
  0x6e   : > { %p1785_p9 = pneg %p1784_p11  ;;  %p1791_p2 = por %p1790_p5, %p1789_p10 }
  0x70   : > { %p1792_p3 = pnand %p1791_p2, %p1785_p9 }
  0x72   : > { %1795 = shalt.err (!%p1792_p3)
}
  0x73   : > { %s2084_s9 = smov 128   ;;  %s2085_s30 = smov 8  }
  0x74   : > { %1605 = dma.hbm_to_vmem [thread:$0]  (!%p2293_p13), %s2317_s25, 2048, %s2319_s27, %s2321_s3, %s2084_s9, %s2084_s9, %s2085_s30  }
  0x75   : > { %s2086_s8 = smov [#allocation10]   ;;  %s1796_s13 = scalar_lea.hbm %s2707_s4, 512 }
  0x76   : > { %s291_s16 = sshll.u32 %s2086_s8, 4  ;;  %p1797_p5 = scmp.ne.s32.totalorder %s2707_s4, %s1796_s13  ;;  %s292_s16 = int_to_ptr.vmem [resolvable:$true] %s291_s16 }
  0x77   : > { %p2778_p10 = scmp.ne.s32.totalorder %s2769_s24, 0  ;;  %p1803_p8 = scmp.lt.u32.totalorder %s1796_s13, %s2707_s4 }
  0x79   : > { %p2779_p1 = pneg %p2778_p10 }
  0x7b   : > { %p1799_p4 = pnand %p1797_p5, %p2779_p1 }
  0x7d   : > { %p1800_p6 = pneg %p1799_p4 }
  0x7f   : > { %p1805_p0 = pnand %p1803_p8, %p1800_p6 }
  0x81   : > { %1808 = shalt.err (!%p1805_p0)
}
  0x82   : > { %s1809_s25 = scalar_lea.vmem %s292_s16, 512  ;;  %p2780_p11 = pmov %p2779_p1 }
  0x83   : > { %p1810_p7 = scmp.ne.s32.totalorder %s292_s16, %s1809_s25  ;;  %p1817_p3 = scmp.lt.s32.totalorder %s292_s16, %s292_s16 }
  0x84   : > { %p1818_p13 = scmp.lt.s32.totalorder %s1809_s25, %s1809_s25 }
  0x85   : > { %p1812_p9 = pnand %p1810_p7, %p2780_p11 }
  0x86   : > { %p1819_p12 = por %p1818_p13, %p1817_p3 }
  0x87   : > { %p1813_p2 = pneg %p1812_p9 }
  0x89   : > { %p1820_p1 = pnand %p1819_p12, %p1813_p2 }
  0x8b   : > { %1823 = shalt.err (!%p1820_p1)
}
  0x8c   : > { %s2781_s27 = smov 4   ;;  %s2782_s9 = smov 64  }
  0x8d   : > { %1598 = dma.hbm_to_vmem [thread:$0]  (!%p2778_p10), %s2707_s4, 512, %s292_s16, [#allocation9], %s2782_s9, %s2782_s9, %s2781_s27  }
  0x8e   : > { %s1303_s30 = sshll.u32 %s2280_s19, 4  ;;  %s308_s8 = scalar_lea.vmem [#allocation2], %s2288_s17 }
  0x8f   : > { %s317_s7 = sshll.u32 %s308_s8, 4  ;;  %s2783_s0 = sld [smem:[#allocation33_spill]]  ;;  %s318_s7 = int_to_ptr.vmem [resolvable:$true] %s317_s7 }
  0x90   : > { %s306_s22 = scalar_lea.sflag [#allocation3], %s2288_s17  ;;  %p2784_p12 = scmp.ne.s32.totalorder %s2777_s5, 0 }
  0x95   : > { %s2381_s24 = scalar_lea.hbm %s2783_s0, %s1303_s30  ;;  %s1829_s27 = scalar_lea.hbm %s2783_s0, 64 }
  0x96   : > { %s1824_s6 = scalar_lea.hbm %s2381_s24, 16  ;;  %p1830_p4 = scmp.lt.u32.totalorder %s2381_s24, %s2783_s0 }
  0x97   : > { %p1825_p13 = scmp.ne.s32.totalorder %s2381_s24, %s1824_s6  ;;  %p1831_p6 = scmp.lt.u32.totalorder %s1829_s27, %s1824_s6 }
  0x98   : > { %p1833_p0 = scmp.lt.u32.totalorder %s1824_s6, %s2381_s24 }
  0x99   : > { %p1827_p5 = pnand %p1825_p13, %p2784_p12  ;;  %p1832_p8 = por %p1831_p6, %p1830_p4 }
  0x9b   : > { %p1828_p10 = pneg %p1827_p5  ;;  %p1834_p7 = por %p1833_p0, %p1832_p8 }
  0x9d   : > { %p1835_p11 = pnand %p1834_p7, %p1828_p10 }
  0x9f   : > { %1838 = shalt.err (!%p1835_p11)
}
  0xa0   : > { %s1839_s20 = scalar_lea.vmem %s318_s7, 16  ;;  %s2087_s8 = smov [#allocation2]  }
  0xa1   : > { %p1840_p9 = scmp.ne.s32.totalorder %s318_s7, %s1839_s20  ;;  %s1844_s23 = sshll.u32 %s2087_s8, 4  ;;  %s1845_s23 = int_to_ptr.vmem [resolvable:$false] %s1844_s23 }
  0xa2   : > { %s1846_s13 = scalar_lea.vmem %s1845_s23, 32  ;;  %p1847_p1 = scmp.lt.s32.totalorder %s318_s7, %s1845_s23 }
  0xa3   : > { %p1842_p2 = pnand %p1840_p9, %p2784_p12  ;;  %p1848_p13 = scmp.lt.s32.totalorder %s1846_s13, %s1839_s20 }
  0xa5   : > { %p1843_p3 = pneg %p1842_p2  ;;  %p1849_p5 = por %p1848_p13, %p1847_p1 }
  0xa7   : > { %p1850_p4 = pnand %p1849_p5, %p1843_p3 }
  0xa9   : > { %1853 = shalt.err (!%p1850_p4)
}
  0xaa   : > { %p2785_p6 = scmp.ne.s32.totalorder %s2773_s18, 0  ;;  %s2406_s25 = scalar_lea.hbm %s2705_s2, %s1303_s30 }
  0xab   : > { %s350_s27 = scalar_lea.vmem [#allocation7], %s2288_s17  ;;  %s1854_s1 = scalar_lea.hbm %s2406_s25, 16 }
  0xac   : > { %1602 = dma.hbm_to_vmem [thread:$0]  (!%p2785_p6), %s2381_s24, 16, %s318_s7, %s306_s22  }
  0xad   : > { %s359_s9 = sshll.u32 %s350_s27, 4  ;;  %p1855_p10 = scmp.ne.s32.totalorder %s2406_s25, %s1854_s1  ;;  %s360_s9 = int_to_ptr.vmem [resolvable:$true] %s359_s9 }
  0xae   : > { %s1859_s19 = scalar_lea.hbm %s2705_s2, 64  ;;  %p1860_p7 = scmp.lt.u32.totalorder %s2406_s25, %s2705_s2 }
  0xaf   : > { %p1857_p8 = pnand %p1855_p10, %p2784_p12  ;;  %p1861_p11 = scmp.lt.u32.totalorder %s1859_s19, %s1854_s1 }
  0xb0   : > { %p1863_p2 = scmp.lt.u32.totalorder %s1854_s1, %s2406_s25 }
  0xb1   : > { %p1858_p0 = pneg %p1857_p8  ;;  %p1862_p9 = por %p1861_p11, %p1860_p7 }
  0xb3   : > { %p1864_p3 = por %p1863_p2, %p1862_p9 }
  0xb5   : > { %p1865_p1 = pnand %p1864_p3, %p1858_p0 }
  0xb7   : > { %1868 = shalt.err (!%p1865_p1)
}
  0xb8   : > { %s1869_s17 = scalar_lea.vmem %s360_s9, 16  ;;  %s2088_s30 = smov [#allocation7]  }
  0xb9   : > { %p1870_p13 = scmp.ne.s32.totalorder %s360_s9, %s1869_s17  ;;  %s1874_s8 = sshll.u32 %s2088_s30, 4  ;;  %s1875_s8 = int_to_ptr.vmem [resolvable:$false] %s1874_s8 }
  0xba   : > { %s1876_s23 = scalar_lea.vmem %s1875_s8, 32  ;;  %p1877_p10 = scmp.lt.s32.totalorder %s360_s9, %s1875_s8 }
  0xbb   : > { %p1872_p5 = pnand %p1870_p13, %p2784_p12  ;;  %p1878_p8 = scmp.lt.s32.totalorder %s1876_s23, %s1869_s17 }
  0xbd   : > { %p1873_p4 = pneg %p1872_p5  ;;  %p1879_p6 = por %p1878_p8, %p1877_p10 }
  0xbf   : > { %p1880_p7 = pnand %p1879_p6, %p1873_p4 }
  0xc1   : > { %1883 = shalt.err (!%p1880_p7)
}
  0xc2   : > { %p2786_p11 = scmp.ne.s32.totalorder %s2773_s18, 0  ;;  %p2787_p0 = scmp.ne.s32.totalorder %s2767_s21, 0 }
  0xc3   : > { %s2430_s5 = sand.u32 (!%p2787_p0), 1, %s2054_s28   ;;  %p2788_p12 = scmp.ne.s32.totalorder (!%p2787_p0), %s2758_s15, 0 }
  0xc4   : > { %1608 = dma.hbm_to_vmem [thread:$0]  (!%p2786_p11), %s2406_s25, 16, %s360_s9, %s2321_s3  }
  0xc5   : > { %368 = sbr.rel (%p2787_p0) target bundleno = 935 (0x3a7), region = 40  ;;  %s371_s13 = scalar_lea.sflag (!%p2787_p0), [#allocation3], %s2430_s5 }
  0xc6   : > { %s373_s6 = scalar_lea.vmem (!%p2787_p0), [#allocation2], %s2430_s5 }
  0xcc   : > { %2013 = dma.done.wait (%p2788_p12), %s371_s13, 16  }
  0xcd   : > { %2015 = vsyncadd (%p2788_p12), %s371_s13, 4294967280  ;;  %s378_s18 = sand.u32 1, %s2195_s12   ;;  %s1311_s21 = sshll.u32 %s2430_s5, 7 }
  0xce   : > { %s379_s3 = scalar_lea.sflag [#allocation6], %s378_s18  ;;  %s2442_s16 = scalar_lea.vmem [#allocation5], %s1311_s21 }
  0xcf   : > { %2017 = dma.done.wait (%p2788_p12), %s379_s3, 2064  }
  0xd0   : > { %2019 = vsyncadd (%p2788_p12), %s379_s3, 4294965232  ;;  %s390_s25 = scalar_lea.vmem [#allocation7], %s2430_s5  ;;  %p2789_p6 = scmp.eq.s32.totalorder %s2195_s12, 0 }
  0xd2   : > { %2021 = dma.done.wait (%p2789_p6), [#allocation9], 768   ;;  %p2790_p9 = pmov %p2789_p6 }
  0xd3   : > { %s2791_s27 = sld [smem:[#allocation21_spill]]  ;;  %s2792_s9 = sld [smem:[#allocation24_spill]] }
  0xd4   : > { %2023 = vsyncadd (%p2790_p9), [#allocation9], 4294966528  ;;  %s2793_s1 = sld [smem:[#allocation23_spill]]  ;;  %s1314_s20 = sshll.u32 %s2430_s5, 2 }
  0xd5   : > { %s1315_s7 = sshll.u32 %s2430_s5, 4  ;;  %s2461_s30 = scalar_lea.vmem [#allocation11], %s1314_s20 }
  0xd6   : > { %s2463_s8 = scalar_lea.vmem [#allocation12], %s1315_s7 }
  0xd9   : > { %s444_s19 = sand.u32 1, %s2791_s27   ;;  %s1317_s24 = sshll.u32 %s2792_s9, 1 }
  0xda   : > { %s1316_s22 = sshll.u32 %s444_s19, 2  ;;  %s2458_s15 = sadd.s32 %s2793_s1, %s1317_s24 }
  0xdb   : > { %s1318_s17 = sshll.u32 %s2458_s15, 7  ;;  %s2465_s23 = scalar_lea.vmem [#allocation14], %s1316_s22 }
  0xdc   : > { %p1319_p2 = scmp.ne.s32.totalorder %s2793_s1, 0 }
  0xdd   : > { %vm466_vm0 = vcmask (!%p1319_p2), 519168   ;;  %v2089_v0 = vmov (!%p1319_p2), 0.0  }
  0xde   : > { %465 = sbr.rel (%p1319_p2) target bundleno = 229 (0xe5), region = 64  ;;  %467 = vst.msk [vmem:[%s2465_s23] sm:$0xf] (!%p1319_p2), %vm466_vm0, %v2089_v0 }
  0xe5 PF: > { %v1320_v1 = vld [vmem:[%s373_s6] ss:$0 sm:$0xff]  ;;  %v469_v2 = vlaneseq  ;;  %v1730_v4 = vld [vmem:[#allocation8] sm:$0xff]   ;;  %vm2743_vm1 = vcmask 523264   ;;  %v1731_v6 = vld [vmem:[#allocation10] sm:$0xff]   ;;  %v2091_v17 = vmov 0.0|0.0  }
  0xe6   : > { %v1329_v3 = vld [vmem:[%s390_s25] ss:$0 sm:$0xff]  ;;  %1476 = vmatprep.mubr.msk.bf16.mxu0 %vm2743_vm1, %v1730_v4  ;;  %1488 = vmatprep.mubr.msk.bf16.mxu1 %vm2743_vm1, %v1731_v6  ;;  %v2090_v12 = vmov 1.0|1.0   ;;  %v1732_v15 = vld [vmem:[#allocation8 + $0x8] sm:$0xff]   ;;  %v2093_v18 = vmov 0.0  }
  0xe7   : > { %v2470_v5 = vshrl.u32 %v469_v2, 7  ;;  %v1733_v16 = vld [vmem:[#allocation10 + $0x8] sm:$0xff]   ;;  %v838_v20 = vld [vmem:[%s2442_s16 + $0x10] sm:$0xff]  ;;  %v2094_v21 = vmov 0   ;;  %v837_v22 = vld [vmem:[%s2442_s16 + $0x8] sm:$0xff]  ;;  %v2525_v43 = vand.u32 127, %v469_v2 }
  0xe8   : > { %v836_v19 = vld [vmem:[%s2442_s16] sm:$0xff]  ;;  %1728 = vset.pattern.permute.xlu0 %v2094_v21  ;;  %1729 = vset.pattern.permute.xlu1 %v2094_v21  ;;  %v839_v23 = vld [vmem:[%s2442_s16 + $0x18] sm:$0xff]  ;;  %v841_v24 = vld [vmem:[%s2442_s16 + $0x28] sm:$0xff]  ;;  %s2798_s13 = sld [smem:[#allocation27_spill]]  ;;  %s1410_s6 = sshll.u32 %s2458_s15, 6 }
  0xe9   : > { %v471_v7 = vadd.s32 8, %v2470_v5  ;;  %vm482_vm2 = vcmp.eq.s32.totalorder %v2470_v5, %v1320_v1  ;;  %v472_v8 = vadd.s32 16, %v2470_v5  ;;  %vm515_vm3 = vcmp.eq.s32.totalorder %v2470_v5, %v1329_v3  ;;  %853 = vperm.xlu0 %1728, %v836_v19   ;;  %859 = vperm.xlu1 %1729, %v838_v20   ;;  %v840_v25 = vld [vmem:[%s2442_s16 + $0x20] sm:$0xff]  ;;  %v843_v26 = vld [vmem:[%s2442_s16 + $0x38] sm:$0xff]  ;;  %v842_v27 = vld [vmem:[%s2442_s16 + $0x30] sm:$0xff]  ;;  %s1062_s21 = sshll.u32 %s2463_s8, 4  ;;  %s2581_s21 = int_to_ptr.vmem [resolvable:$true] %s1062_s21 }
  0xea   : > { %v473_v9 = vadd.s32 24, %v2470_v5  ;;  %v474_v10 = vadd.s32 32, %v2470_v5  ;;  %v475_v11 = vadd.s32 40, %v2470_v5  ;;  %v476_v13 = vadd.s32 48, %v2470_v5  ;;  %v845_v28 = vld [vmem:[%s2442_s16 + $0x48] sm:$0xff]  ;;  %v844_v29 = vld [vmem:[%s2442_s16 + $0x40] sm:$0xff] }
  0xeb   : > { %vm483_vm4 = vcmp.eq.s32.totalorder %v471_v7, %v1320_v1  ;;  %vm516_vm5 = vcmp.eq.s32.totalorder %v471_v7, %v1329_v3  ;;  %vm484_vm6 = vcmp.eq.s32.totalorder %v472_v8, %v1320_v1  ;;  %vm517_vm9 = vcmp.eq.s32.totalorder %v472_v8, %v1329_v3  ;;  %v847_v30 = vld [vmem:[%s2442_s16 + $0x58] sm:$0xff]  ;;  %v846_v31 = vld [vmem:[%s2442_s16 + $0x50] sm:$0xff]  ;;  %v849_v32 = vld [vmem:[%s2442_s16 + $0x68] sm:$0xff]  ;;  %s2799_s25 = sld [smem:[#allocation37_spill]]  ;;  %s2585_s9 = scalar_lea.sflag [#allocation13], %s378_s18 }
  0xec   : > { %vm1340_vm7 = vmpackc.low %vm483_vm4, %vm482_vm2  ;;  %vm485_vm8 = vcmp.eq.s32.totalorder %v473_v9, %v1320_v1  ;;  %vm518_vm10 = vcmp.eq.s32.totalorder %v473_v9, %v1329_v3  ;;  %vm486_vm12 = vcmp.eq.s32.totalorder %v474_v10, %v1320_v1  ;;  %vm487_vm13 = vcmp.eq.s32.totalorder %v475_v11, %v1320_v1  ;;  %v848_v33 = vld [vmem:[%s2442_s16 + $0x60] sm:$0xff]  ;;  %v851_v34 = vld [vmem:[%s2442_s16 + $0x78] sm:$0xff]  ;;  %s1884_s20 = scalar_lea.vmem %s2581_s21, 256  ;;  %s2095_s7 = smov [#allocation12]  }
  0xed   : > { %1468 = vmatprep.subr.msk.bf16.mxu0 %vm1340_vm7, %v2090_v12  ;;  %vm1354_vm11 = vmpackc.low %vm516_vm5, %vm515_vm3  ;;  %v477_v14 = vadd.s32 56, %v2470_v5  ;;  %vm519_vm15 = vcmp.eq.s32.totalorder %v474_v10, %v1329_v3  ;;  %vm520_vm0 = vcmp.eq.s32.totalorder %v475_v11, %v1329_v3  ;;  %vm488_vm5 = vcmp.eq.s32.totalorder %v476_v13, %v1320_v1  ;;  %856 = vperm.xlu0 %1728, %v837_v22   ;;  %v850_v35 = vld [vmem:[%s2442_s16 + $0x70] sm:$0xff]  ;;  %v1734_v6 = vld [vmem:[#allocation10 + $0x10] sm:$0xff]   ;;  %p1885_p3 = scmp.ne.s32.totalorder %s2581_s21, %s1884_s20  ;;  %s1888_s19 = sshll.u32 %s2095_s7, 4  ;;  %s1889_s19 = int_to_ptr.vmem [resolvable:$false] %s1888_s19 }
  0xee   : > { %1480 = vmatprep.subr.msk.bf16.mxu1 %vm1354_vm11, %v2090_v12  ;;  %1469 = vmatpush3.bf16.msk.msra.mxu0 %vm1340_vm7, %v2090_v12  ;;  %vm1342_vm14 = vmpackc.low %vm485_vm8, %vm484_vm6  ;;  %vm521_vm7 = vcmp.eq.s32.totalorder %v476_v13, %v1329_v3  ;;  %v720_v36 = vmul.u32 8, %v2470_v5  ;;  %v1735_v7 = vld [vmem:[#allocation10 + $0x18] sm:$0xff]   ;;  %p2801_p1 = scmp.ne.s32.totalorder %s2798_s13, 0  ;;  %s1890_s24 = scalar_lea.vmem %s1889_s19, 512 }
  0xef   : > { %1481 = vmatpush3.bf16.msk.msra.mxu1 %vm1354_vm11, %v2090_v12  ;;  %1470 = vmatprep.subr.msk.bf16.mxu0 %vm1342_vm14, %v2090_v12  ;;  %vm1356_vm2 = vmpackc.low %vm518_vm10, %vm517_vm9  ;;  %vm489_vm1 = vcmp.eq.s32.totalorder %v477_v14, %v1320_v1  ;;  %vm522_vm6 = vcmp.eq.s32.totalorder %v477_v14, %v1329_v3  ;;  %vm2794_vm9 = vcmask 523264   ;;  %vm2092_vm10 = vmmov 0   ;;  %p1891_p4 = scmp.lt.s32.totalorder %s2581_s21, %s1889_s19  ;;  %p1892_p10 = scmp.lt.s32.totalorder %s1890_s24, %s1884_s20 }
  0xf0   : > { %1482 = vmatprep.subr.msk.bf16.mxu1 %vm1356_vm2, %v2090_v12  ;;  %vm1344_vm3 = vmpackc.low %vm487_vm13, %vm486_vm12  ;;  %862 = vperm.xlu1 %1729, %v839_v23   ;;  %v722_v47 = vadd.s32 8, %v720_v36  ;;  %vm721_vm12 = vcmp.ge.s32.totalorder %v2525_v43, %v720_v36  ;;  %p1886_p13 = pnand %p1885_p3, %p2801_p1 }
  0xf1   : > { %vm1358_vm4 = vmpackc.low %vm520_vm0, %vm519_vm15  ;;  %865 = vperm.xlu0 %1728, %v840_v25   ;;  %vm731_vm15 = vcmask 261120   ;;  %s2800_s1 = smov %s2799_s25  ;;  %s2579_s27 = scalar_lea.hbm %s2799_s25, %s1410_s6 }
  0xf2   : > { %1471 = vmatpush3.bf16.msk.msra.mxu0 %vm1342_vm14, %v2090_v12  ;;  %vm1346_vm8 = vmpackc.low %vm489_vm1, %vm488_vm5  ;;  %vm723_vm13 = vcmp.lt.s32.totalorder %v2525_v43, %v722_v47  ;;  %p1887_p5 = pneg %p1886_p13  ;;  %p1893_p8 = por %p1892_p10, %p1891_p4 }
  0xf3   : > { %1483 = vmatpush3.bf16.msk.msra.mxu1 %vm1356_vm2, %v2090_v12  ;;  %1472 = vmatprep.subr.msk.bf16.mxu0 %vm1344_vm3, %v2090_v12  ;;  %vm1360_vm11 = vmpackc.low %vm522_vm6, %vm521_vm7 }
  0xf4   : > { %1484 = vmatprep.subr.msk.bf16.mxu1 %vm1358_vm4, %v2090_v12  ;;  %vm2795_vm1 = vmmov %vm2794_vm9  ;;  %868 = vperm.xlu1 %1729, %v841_v24   ;;  %p1894_p7 = pnand %p1893_p8, %p1887_p5 }
  0xf5   : > { %871 = vperm.xlu0 %1728, %v842_v27   ;;  %vm724_vm14 = vmand %vm721_vm12, %vm723_vm13 }
  0xf6   : > { %1473 = vmatpush3.bf16.msk.msra.mxu0 %vm1344_vm3, %v2090_v12  ;;  %v1366_v53 = vsel %vm724_vm14, 1.0, %v2093_v18 }
  0xf7   : > { %1485 = vmatpush3.bf16.msk.msra.mxu1 %vm1358_vm4, %v2090_v12  ;;  %1474 = vmatprep.subr.msk.bf16.mxu0 %vm1346_vm8, %v2090_v12 }
  0xf8   : > { %1486 = vmatprep.subr.msk.bf16.mxu1 %vm1360_vm11, %v2090_v12  ;;  %874 = vperm.xlu1 %1729, %v843_v26  }
  0xf9   : > { %877 = vperm.xlu0 %1728, %v844_v29  }
  0xfa   : > { %1475 = vmatpush3.bf16.msk.msra.mxu0 %vm1346_vm8, %v2090_v12 }
  0xfb   : > { %1487 = vmatpush3.bf16.msk.msra.mxu1 %vm1360_vm11, %v2090_v12  ;;  %1542 = vmatprep.subr.bf16.mxu0 %v2091_v17 }
  0xfc   : > { %1548 = vmatprep.subr.bf16.mxu1 %v2091_v17  ;;  %880 = vperm.xlu1 %1729, %v845_v28  }
  0xfd   : > { %1477 = vmatmul.mubr.msk.bf16.vlgmr.msra.gmra.mrb[0].mxu0 %vm2794_vm9, %v1732_v15  ;;  %883 = vperm.xlu0 %1728, %v846_v31  }
  0xfe   : > { %1489 = vmatmul.mubr.msk.bf16.vlgmr.msra.gmra.mrb[0].mxu1 %vm2795_vm1, %v1733_v16  ;;  %1504 = vmatprep.mubr.msk.f32.mxu0 %vm2092_vm10, %v2093_v18 }
 0x100   : > { %886 = vperm.xlu1 %1729, %v847_v30  }
 0x101   : > { %889 = vperm.xlu0 %1728, %v848_v33  }
 0x104   : > { %892 = vperm.xlu1 %1729, %v849_v32  }
 0x105   : > { %895 = vperm.xlu0 %1728, %v850_v35  }
 0x108   : > { %898 = vperm.xlu1 %1729, %v851_v34  }
 0x168   : > { %v854_v54 = vpop.permute.xlu0 %853  ;;  %v860_v55 = vpop.permute.xlu1 %859 }
 0x169   : > { %vm900_vm0 = vcmp.eq.s32.totalorder %v2525_v43, %v854_v54  ;;  %vm902_vm2 = vcmp.eq.s32.totalorder %v2525_v43, %v860_v55 }
 0x16c   : > { %v857_v56 = vpop.permute.xlu0 %856 }
 0x16d   : > { %vm901_vm3 = vcmp.eq.s32.totalorder %v2525_v43, %v857_v56 }
 0x16e   : > { %vm1549_vm5 = vmpackc.low %vm901_vm3, %vm900_vm0 }
 0x16f   : > { %v863_v57 = vpop.permute.xlu1 %862  ;;  %1550 = vmatpush3.bf16.msk.msra.mxu1 %vm1549_vm5, %v2090_v12 }
 0x170   : > { %vm903_vm4 = vcmp.eq.s32.totalorder %v2525_v43, %v863_v57  ;;  %1551 = vmatprep.subr.bf16.mxu1 %v2091_v17  ;;  %v866_v59 = vpop.permute.xlu0 %865 }
 0x171   : > { %vm1552_vm7 = vmpackc.low %vm903_vm4, %vm902_vm2  ;;  %vm904_vm8 = vcmp.eq.s32.totalorder %v2525_v43, %v866_v59 }
 0x173   : > { %v869_v58 = vpop.permute.xlu1 %868  ;;  %1553 = vmatpush3.bf16.msk.msra.mxu1 %vm1552_vm7, %v2090_v12 }
 0x174   : > { %vm905_vm6 = vcmp.eq.s32.totalorder %v2525_v43, %v869_v58  ;;  %1554 = vmatprep.subr.bf16.mxu1 %v2091_v17  ;;  %v872_v61 = vpop.permute.xlu0 %871 }
 0x175   : > { %vm1555_vm11 = vmpackc.low %vm905_vm6, %vm904_vm8  ;;  %vm906_vm1 = vcmp.eq.s32.totalorder %v2525_v43, %v872_v61 }
 0x177   : > { %v875_v60 = vpop.permute.xlu1 %874  ;;  %1556 = vmatpush3.bf16.msk.msra.mxu1 %vm1555_vm11, %v2090_v12 }
 0x178   : > { %vm907_vm9 = vcmp.eq.s32.totalorder %v2525_v43, %v875_v60  ;;  %1557 = vmatprep.subr.bf16.mxu1 %v2091_v17  ;;  %v878_v63 = vpop.permute.xlu0 %877 }
 0x179   : > { %vm1558_vm12 = vmpackc.low %vm907_vm9, %vm906_vm1  ;;  %vm908_vm14 = vcmp.eq.s32.totalorder %v2525_v43, %v878_v63  ;;  %vm2796_vm9 = vcmask 523264  }
 0x17a   : > { %1492 = vmatprep.mubr.msk.bf16.mxu1 %vm2796_vm9, %v1734_v6  ;;  %vm2797_vm1 = vmmov %vm2796_vm9 }
 0x17b   : > { %v881_v62 = vpop.permute.xlu1 %880  ;;  %1559 = vmatpush3.bf16.msk.msra.mxu1 %vm1558_vm12, %v2090_v12 }
 0x17c   : > { %vm909_vm13 = vcmp.eq.s32.totalorder %v2525_v43, %v881_v62  ;;  %1560 = vmatprep.subr.bf16.mxu1 %v2091_v17  ;;  %v884_v1 = vpop.permute.xlu0 %883  ;;  %1493 = vmatmul.mubr.msk.bf16.gmra.mrb[4].mxu1 %vm2797_vm1, %v1735_v7 }
 0x17d   : > { %vm910_vm2 = vcmp.eq.s32.totalorder %v2525_v43, %v884_v1  ;;  %1539 = vmatprep.mubr.msk.f32.mxu1 %vm2092_vm10, %v2093_v18 }
 0x17f   : > { %v887_v0 = vpop.permute.xlu1 %886 }
 0x180   : > { %vm911_vm0 = vcmp.eq.s32.totalorder %v2525_v43, %v887_v0  ;;  %v890_v3 = vpop.permute.xlu0 %889 }
 0x181   : > { %vm1564_vm3 = vmpackc.low %vm911_vm0, %vm910_vm2  ;;  %vm912_vm5 = vcmp.eq.s32.totalorder %v2525_v43, %v890_v3 }
 0x183   : > { %v893_v2 = vpop.permute.xlu1 %892 }
 0x184   : > { %vm913_vm4 = vcmp.eq.s32.totalorder %v2525_v43, %v893_v2  ;;  %v896_v5 = vpop.permute.xlu0 %895 }
 0x185   : > { %vm1567_vm7 = vmpackc.low %vm913_vm4, %vm912_vm5  ;;  %vm914_vm8 = vcmp.eq.s32.totalorder %v2525_v43, %v896_v5 }
 0x187   : > { %v899_v4 = vpop.permute.xlu1 %898 }
 0x188   : > { %vm915_vm6 = vcmp.eq.s32.totalorder %v2525_v43, %v899_v4 }
 0x189   : > { %vm1570_vm11 = vmpackc.low %vm915_vm6, %vm914_vm8 }
 0x1d0   : > { %v1478_v37 = vpop.f32.mrb[0].mxu0 }
 0x1d1   : > { %v1490_v38 = vpop.f32.mrb[0].mxu1  ;;  %v598_v39 = vpop.f32.mrb[1].mxu0 }
 0x1d2   : > { %v729_v40 = vmul.f32 %v1490_v38, %v1478_v37  ;;  %v687_v41 = vpop.f32.mrb[1].mxu1  ;;  %v1479_v42 = vpop.f32.mrb[2].mxu0 }
 0x1d3   : > { %v727_v44 = vmul.f32 %v687_v41, %v598_v39  ;;  %v1491_v45 = vpop.f32.mrb[2].mxu1  ;;  %v601_v46 = vpop.f32.mrb[3].mxu0 }
 0x1d4   : > { %v730_v48 = vmul.f32 %v1491_v45, %v1479_v42  ;;  %v690_v49 = vpop.f32.mrb[3].mxu1 }
 0x1d5   : > { %v728_v50 = vmul.f32 %v690_v49, %v601_v46 }
 0x1d6   : > { %v1546_v51 = vpack.c.bf16 %v730_v48, %v729_v40 }
 0x1d7   : > { %v1543_v52 = vpack.c.bf16 %v728_v50, %v727_v44 }
 0x1d9   : > { %1544 = vmatpush3.bf16.msra.mxu0 %v1543_v52 }
 0x1da   : > { %1545 = vmatprep.subr.bf16.mxu0 %v2091_v17 }
 0x1dd   : > { %1547 = vmatpush3.bf16.msra.mxu0 %v1546_v51 }
 0x1e0   : > { %1505 = vmatmul.mubr.msk.f32.vlgmr.msra.gmra.mrb[4].mxu0 %vm731_vm15, %v1366_v53  ;;  %vm1561_vm15 = vmpackc.low %vm909_vm13, %vm908_vm14 }
 0x1e1   : > { %1562 = vmatpush3.bf16.msk.msra.mxu1 %vm1561_vm15, %v2090_v12 }
 0x1e2   : > { %1563 = vmatprep.subr.bf16.mxu1 %v2091_v17 }
 0x1e5   : > { %1565 = vmatpush3.bf16.msk.msra.mxu1 %vm1564_vm3, %v2090_v12 }
 0x1e6   : > { %1566 = vmatprep.subr.bf16.mxu1 %v2091_v17 }
 0x1e9   : > { %1568 = vmatpush3.bf16.msk.msra.mxu1 %vm1567_vm7, %v2090_v12 }
 0x1ea   : > { %1569 = vmatprep.subr.bf16.mxu1 %v2091_v17 }
 0x1ed   : > { %1571 = vmatpush3.bf16.msk.msra.mxu1 %vm1570_vm11, %v2090_v12  ;;  %v805_v12 = vstv %s1318_s17 }
 0x1ee   : > { %v806_v13 = vadd.s32 %v805_v12, %v2525_v43 }
 0x1f0   : > { %vm807_vm12 = vcmp.lt.s32.totalorder %v806_v13, 300 }
 0x24f   : > { %v1494_v16 = vpop.f32.mrb[4].mxu1 }
 0x250   : > { %v703_v17 = vpop.f32.mrb[5].mxu1 }
 0x251   : > { %v1495_v18 = vpop.f32.mrb[6].mxu1 }
 0x252   : > { %v1429_v19 = vpack.c.bf16 %v1495_v18, %v1494_v16  ;;  %v706_v20 = vpop.f32.mrb[7].mxu1 }
 0x253   : > { %v1424_v21 = vpack.c.bf16 %v706_v20, %v703_v17 }
 0x254   : > { %1431 = vst [vmem:[%s2463_s8 + $0x8] sm:$0xff] %v1429_v19  }
 0x255   : > { %1425 = vst [vmem:[%s2463_s8] sm:$0xff] %v1424_v21  }
 0x2b3   : > { %v801_v8 = vpop.f32.mrb[4].mxu0 }
 0x2b4   : > { %v1368_v9 = vclamps-f32 %v801_v8, 10.0  ;;  %v1506_v10 = vpop.f32.mrb[5].mxu0 }
 0x2b6   : > { %v810_v11 = vmul.f32 1.442695, %v1368_v9 }
 0x2b8   : > { %1736 = vpow2.f32 %v810_v11 }
 0x2c2   : > { %v1737_v14 = vpop.eup %1736 }
 0x2c3   : > { %1540 = vmatmul.mubr.msk.f32.vlgmr.msra.gmra.mrb[8].mxu1 %vm807_vm12, %v1737_v14  ;;  %v814_v15 = vsel %vm807_vm12, %v1737_v14, 0.0 }
 0x2c4   : > { %815 = vst [vmem:[%s2461_s30] sm:$0xf] %v814_v15 }
 0x2c5   : > { %1897 = shalt.err (!%p1894_p7)
}
 0x2c6   : > { %s1898_s12 = scalar_lea.hbm %s2579_s27, 256  ;;  %s1902_s17 = scalar_lea.hbm %s2800_s1, 1024 }
 0x2c7   : > { %p1899_p11 = scmp.ne.s32.totalorder %s2579_s27, %s1898_s12  ;;  %p1903_p6 = scmp.lt.u32.totalorder %s2579_s27, %s2800_s1 }
 0x2c8   : > { %p1904_p9 = scmp.lt.u32.totalorder %s1902_s17, %s1898_s12  ;;  %p1906_p3 = scmp.lt.u32.totalorder %s1898_s12, %s2579_s27 }
 0x2c9   : > { %p1900_p0 = pnand %p1899_p11, %p2801_p1 }
 0x2ca   : > { %p1905_p2 = por %p1904_p9, %p1903_p6 }
 0x2cb   : > { %p1901_p12 = pneg %p1900_p0 }
 0x2cc   : > { %p1907_p13 = por %p1906_p3, %p1905_p2 }
 0x2ce   : > { %p1908_p5 = pnand %p1907_p13, %p1901_p12 }
 0x2d0   : > { %1911 = shalt.err (!%p1908_p5)
}
 0x2d1   : > { %s2096_s16 = smov 64   ;;  %s2097_s25 = smov 256  }
 0x2d2   : > { %s2098_s20 = smov 4   ;;  %s2802_s24 = sld [smem:[#allocation36_spill]] }
 0x2d3   : > { %1587 = dma.vmem_to_hbm [thread:$0]  (%p2801_p1), %s2581_s21, 256, %s2579_s27, %s2585_s9, %s2096_s16, %s2097_s25, %s2098_s20  }
 0x2d4   : > { %s1048_s22 = sshll.u32 %s2461_s30, 4  ;;  %s1023_s17 = scalar_lea.sflag [#allocation4], %s2430_s5  ;;  %s1049_s22 = int_to_ptr.vmem [resolvable:$true] %s1048_s22 }
 0x2d5   : > { %s1912_s8 = scalar_lea.vmem %s1049_s22, 64  ;;  %s2099_s3 = smov [#allocation11]  }
 0x2d6   : > { %p1913_p4 = scmp.ne.s32.totalorder %s1049_s22, %s1912_s8  ;;  %s1916_s0 = sshll.u32 %s2099_s3, 4  ;;  %s1917_s0 = int_to_ptr.vmem [resolvable:$false] %s1916_s0 }
 0x2d7   : > { %s1918_s1 = scalar_lea.vmem %s1917_s0, 128  ;;  %p1919_p7 = scmp.lt.s32.totalorder %s1049_s22, %s1917_s0 }
 0x2d8   : > { %s2803_s12 = smov %s2802_s24  ;;  %s2614_s18 = scalar_lea.hbm %s2802_s24, %s1410_s6 }
 0x2d9   : > { %p1914_p10 = pnand %p1913_p4, %p2801_p1  ;;  %p1920_p11 = scmp.lt.s32.totalorder %s1918_s1, %s1912_s8 }
 0x2db   : > { %p1915_p8 = pneg %p1914_p10  ;;  %p1921_p0 = por %p1920_p11, %p1919_p7 }
 0x2dd   : > { %p1922_p12 = pnand %p1921_p0, %p1915_p8 }
 0x2df   : > { %1925 = shalt.err (!%p1922_p12)
}
 0x2e0   : > { %s1926_s5 = scalar_lea.hbm %s2614_s18, 64  ;;  %s1930_s6 = scalar_lea.hbm %s2803_s12, 256 }
 0x2e1   : > { %p1927_p6 = scmp.ne.s32.totalorder %s2614_s18, %s1926_s5  ;;  %p1931_p3 = scmp.lt.u32.totalorder %s2614_s18, %s2803_s12 }
 0x2e2   : > { %p1932_p13 = scmp.lt.u32.totalorder %s1930_s6, %s1926_s5  ;;  %p1934_p4 = scmp.lt.u32.totalorder %s1926_s5, %s2614_s18 }
 0x2e3   : > { %p1928_p9 = pnand %p1927_p6, %p2801_p1 }
 0x2e4   : > { %p1933_p5 = por %p1932_p13, %p1931_p3 }
 0x2e5   : > { %p1929_p2 = pneg %p1928_p9 }
 0x2e6   : > { %p1935_p10 = por %p1934_p4, %p1933_p5 }
 0x2e8   : > { %p1936_p8 = pnand %p1935_p10, %p1929_p2 }
 0x2ea   : > { %1939 = shalt.err (!%p1936_p8)
}
 0x2eb   : > { %s2804_s1 = sld [smem:[#allocation24_spill]]  ;;  %s2805_s27 = sld [smem:[#allocation29_spill]]  ;;  %v948_v22 = vld [vmem:[%s2465_s23] sm:$0xf]  ;;  %vm1020_vm10 = vcmask 519168  }
 0x2ec   : > { %1586 = dma.vmem_to_hbm [thread:$0]  (%p2801_p1), %s1049_s22, 64, %s2614_s18, %s1023_s17  }
 0x2ed   : > { %s1078_s25 = sshll.u32 %s2465_s23, 4  ;;  %s2806_s19 = sld [smem:[#allocation38_spill]]  ;;  %s1079_s25 = int_to_ptr.vmem [resolvable:$true] %s1078_s25 }
 0x2ee   : > { %s1940_s13 = scalar_lea.vmem %s1079_s25, 64  ;;  %s2100_s18 = smov [#allocation14]  }
 0x2ef   : > { %p1941_p7 = scmp.ne.s32.totalorder %s1079_s25, %s1940_s13  ;;  %s1944_s22 = sshll.u32 %s2100_s18, 4  ;;  %s1945_s22 = int_to_ptr.vmem [resolvable:$false] %s1944_s22 }
 0x2f0   : > { %s1946_s17 = scalar_lea.vmem %s1945_s22, 128  ;;  %p1947_p1 = scmp.lt.s32.totalorder %s1079_s25, %s1945_s22 }
 0x2f1   : > { %s1413_s16 = sshll.u32 %s2804_s1, 6  ;;  %p2807_p11 = scmp.ne.s32.totalorder %s2805_s27, 0 }
 0x2f2   : > { %p1948_p6 = scmp.lt.s32.totalorder %s1946_s17, %s1940_s13 }
 0x2f3   : > { %s2641_s24 = scalar_lea.hbm %s2806_s19, %s1413_s16  ;;  %p1942_p0 = pnand %p1941_p7, %p2807_p11 }
 0x2f4   : > { %p1949_p9 = por %p1948_p6, %p1947_p1 }
 0x2f5   : > { %p1943_p12 = pneg %p1942_p0 }
 0x2f7   : > { %p1950_p2 = pnand %p1949_p9, %p1943_p12 }
 0x396   : > { %v1015_v23 = vpop.f32.mrb[8].mxu1 }
 0x397   : > { %v1019_v24 = vadd.f32 %v1015_v23, %v948_v22  ;;  %v1541_v25 = vpop.f32.mrb[9].mxu1 }
 0x399   : > { %1021 = vst.msk [vmem:[%s2465_s23] sm:$0xf] %vm1020_vm10, %v1019_v24 }
 0x39a   : > { %1953 = shalt.err (!%p1950_p2)
}
 0x39b   : > { %s1954_s23 = scalar_lea.hbm %s2641_s24, 64  ;;  %s1958_s5 = scalar_lea.hbm %s2806_s19, 128 }
 0x39c   : > { %p1955_p3 = scmp.ne.s32.totalorder %s2641_s24, %s1954_s23  ;;  %p1959_p4 = scmp.lt.u32.totalorder %s2641_s24, %s2806_s19 }
 0x39d   : > { %p1960_p10 = scmp.lt.u32.totalorder %s1958_s5, %s1954_s23  ;;  %p1962_p7 = scmp.lt.u32.totalorder %s1954_s23, %s2641_s24 }
 0x39e   : > { %p1956_p13 = pnand %p1955_p3, %p2807_p11 }
 0x39f   : > { %p1961_p8 = por %p1960_p10, %p1959_p4 }
 0x3a0   : > { %p1957_p5 = pneg %p1956_p13 }
 0x3a1   : > { %p1963_p0 = por %p1962_p7, %p1961_p8 }
 0x3a3   : > { %p1964_p12 = pnand %p1963_p0, %p1957_p5 }
 0x3a5   : > { %1967 = shalt.err (!%p1964_p12)
}
 0x3a6   : > { %1588 = dma.vmem_to_hbm [thread:$0]  (%p2807_p11), %s1079_s25, 64, %s2641_s24, %s2585_s9  }
 0x3a7 PF: > { %s2808_s6 = sld [smem:[#allocation26_spill]]  ;;  %s2809_s21 = sld [smem:[#allocation22_spill]] }
 0x3a8   : > { %s2810_s0 = sld [smem:[#allocation28_spill]] }
 0x3ad   : > { %p1624_p1 = scmp.ge.s32.totalorder %s2808_s6, 2  ;;  %s1090_s1 = sand.u32 1, %s2809_s21  }
 0x3ae   : > { %p2811_p6 = scmp.ne.s32.totalorder %s2810_s0, 0  ;;  %s1091_s16 = scalar_lea.sflag [#allocation4], %s1090_s1 }
 0x3b0   : > { %p1610_p9 = pnand %p1624_p1, %p2811_p6 }
 0x3b2   : > { %2025 = dma.done.wait (!%p1610_p9), %s1091_s16, 64  }
 0x3b3   : > { %2027 = vsyncadd (!%p1610_p9), %s1091_s16, 4294967232  ;;  %s2812_s20 = sadd.s32 4294967294, %s2808_s6  }
 0x3b4   : > { %s1099_s7 = sand.u32 1, %s2812_s20  }
 0x3b5   : > { %s1100_s13 = scalar_lea.sflag [#allocation13], %s1099_s7 }
 0x3b6   : > { %2029 = dma.done.wait (!%p1610_p9), %s1100_s13, 256  }
 0x3b7   : > { %2031 = vsyncadd (!%p1610_p9), %s1100_s13, 4294967040  ;;  %s2813_s27 = sld [smem:[#allocation30_spill]] }
 0x3bd   : > { %p2814_p2 = scmp.ne.s32.totalorder %s2813_s27, 0 }
 0x3bf   : > { %p1616_p11 = pnand %p1624_p1, %p2814_p2 }
 0x3c1   : > { %2033 = dma.done.wait (!%p1616_p11), %s1100_s13, 64  }
 0x3c2   : > { %2035 = vsyncadd (!%p1616_p11), %s1100_s13, 4294967232  ;;  %s31_s18 = sadd.s32 1, %s2808_s6   ;;  %s2815_s24 = sld [smem:[#allocation21_spill]] }
 0x3c3   : > { %p28_p3 = scmp.ge.s32.totalorder %s31_s18, 6   ;;  %s2816_s30 = sld [smem:[#allocation25_spill]] }
 0x3c4   : > { %s2817_s9 = sld [smem:[#allocation31_spill]]  ;;  %s2818_s22 = sld [smem:[#allocation32_spill]] }
 0x3c5   : > { %s2819_s25 = smov %s2046_s26  ;;  %s2820_s26 = smov %s2309_s11 }
 0x3c6   : > { %s2821_s27 = smov %s2054_s28  ;;  %s2822_s28 = smov %s2058_s29 }
 0x3c7   : > { %s2823_s29 = smov %s2312_s14  ;;  %s2824_s8 = smov %s2074_s10 }
 0x3c8   : > { %s2826_s11 = smov %s31_s18  ;;  %30 = sbr.rel (!%p28_p3) target bundleno = 21 (0x15), region = 153 }
 0x3ca   : > { %s2825_s10 = smov %s2818_s22 }
 0x3cf   :  { %1114 = vsyncpa [#allocation3], 1 }
 0x3d0   :  { %1116 = vsyncpa [#allocation3 + $0x1], 1 }
 0x3d1   :  { %1117 = vsyncpa [#allocation6], 1 }
 0x3d2   :  { %1119 = vsyncpa [#allocation6 + $0x1], 1 }
 0x3d3   :  { %1120 = vsyncpa [#allocation9], 1 }
 0x3d4   :  { %1121 = vsyncpa [#allocation4], 1 }
 0x3d5   :  { %1123 = vsyncpa [#allocation4 + $0x1], 1 }
 0x3d6   :  { %1124 = vsyncpa [#allocation13], 1 }
 0x3d7   :  { %1126 = vsyncpa [#allocation13 + $0x1], 1 }

</bundles_post_ra>
